<compile_context>
chip_gen: v6e
topology: v6e:2x2x1
jax: 0.10.0
libtpu: 0.0.40
codegen_flags: <defaults>
</compile_context>

<pallas_src>
import jax
import jax.numpy as jnp
from jax.experimental import pallas as pl
from jax.experimental.pallas import tpu as pltpu


def _round_up(x: int, m: int) -> int:
    return ((x + m - 1) // m) * m


def rnn_cell_kernel(x_ref, h_ref, w_ref, u_ref, b_ref, o_ref):
    """One (TM, TN) output tile: o = tanh(x @ W + h @ U + b).

    K is not tiled — both contractions run in a single MXU pass with f32
    accumulation, then bias (VPU) + tanh (EUP) are applied once and the result
    is stored directly to the output tile (no accumulator scratch, no pl.when
    gating).
    """
    acc = jnp.dot(x_ref[...], w_ref[...], preferred_element_type=jnp.float32)
    acc = acc + jnp.dot(h_ref[...], u_ref[...], preferred_element_type=jnp.float32)
    o_ref[...] = jnp.tanh(acc + b_ref[...]).astype(o_ref.dtype)


def prepare_rnn_cell_params(W, U, b, *, compute_dtype=jnp.bfloat16):
    """One-time parameter prep (call at load time, NOT per step).

    Casts W/U to the MXU compute dtype and zero-pads the hidden (output/lane)
    dimension to a multiple of 128 so the kernel's stores are lane-dense.
    The contraction dims stay unpadded (full-dim blocks are legal).
    """
    input_size, hidden_size = W.shape
    assert U.shape == (hidden_size, hidden_size)
    assert b.shape == (hidden_size,)
    Np = _round_up(hidden_size, 128)
    W_p = (
        jnp.zeros((input_size, Np), compute_dtype)
        .at[:, :hidden_size].set(W.astype(compute_dtype))
    )
    U_p = (
        jnp.zeros((hidden_size, Np), compute_dtype)
        .at[:, :hidden_size].set(U.astype(compute_dtype))
    )
    b_p = (
        jnp.zeros((1, Np), jnp.float32)
        .at[0, :hidden_size].set(b.astype(jnp.float32))
    )
    return W_p, U_p, b_p


@jax.jit
def rnn_cell_forward(x, h, W_p, U_p, b_p):
    """One step of the RNN cell: h_new = tanh(x @ W + h @ U + b).

    W_p / U_p / b_p must come from `prepare_rnn_cell_params` (pre-cast, hidden
    dim pre-padded to a multiple of 128) so no weight copy happens per step.
    """
    batch, input_size = x.shape
    _, hidden_size = h.shape
    Kw, Np = W_p.shape
    assert Kw == input_size
    assert U_p.shape == (hidden_size, Np)
    assert b_p.shape == (1, Np)

    compute_dtype = W_p.dtype
    out_dtype = x.dtype

    # --- M tiling: one tile for small (inference) batches, 256-row tiles
    #     otherwise.  Sublane-align (16 rows for packed bf16).
    sublane = 16 if compute_dtype == jnp.bfloat16 else 8
    if batch <= 256:
        TM = Mp = _round_up(batch, sublane)
    else:
        TM = 256
        Mp = _round_up(batch, TM)

    x_c = x.astype(compute_dtype)
    h_c = h.astype(compute_dtype)
    if Mp != batch:
        # Cheap per-step activation padding (weights are never touched here).
        x_c = jnp.pad(x_c, ((0, Mp - batch), (0, 0)))
        h_c = jnp.pad(h_c, ((0, Mp - batch), (0, 0)))

    # --- N tiling: biggest of 1024/512/256/128 dividing Np (Np is a multiple
    #     of 128).  Big lane-dense tiles -> fewer grid steps, unmasked stores.
    TN = 128
    for cand in (1024, 512, 256):
        if Np % cand == 0:
            TN = cand
            break
    # v7x has 2 TensorCores: if the grid would collapse to a single block,
    # split N so both cores get a "parallel" block (no effect on v5e/v6e).
    if Mp // TM == 1 and Np // TN == 1 and TN >= 512:
        TN //= 2

    grid = (Mp // TM, Np // TN)
    nm, nn = grid

    # Advisory cost estimate reflecting the actual streaming pattern:
    # x/h are re-read once per N tile, W/U once per M tile.
    cost = pl.CostEstimate(
        flops=2 * Mp * Np * (input_size + hidden_size),
        transcendentals=Mp * Np,
        bytes_accessed=(
            nn * x_c.size * x_c.dtype.itemsize
            + nn * h_c.size * h_c.dtype.itemsize
            + nm * W_p.size * W_p.dtype.itemsize
            + nm * U_p.size * U_p.dtype.itemsize
            + nm * Np * b_p.dtype.itemsize
            + Mp * Np * jnp.dtype(out_dtype).itemsize
        ),
    )

    out_padded = pl.pallas_call(
        rnn_cell_kernel,
        out_shape=jax.ShapeDtypeStruct((Mp, Np), out_dtype),
        grid_spec=pltpu.PrefetchScalarGridSpec(
            num_scalar_prefetch=0,
            grid=grid,
            in_specs=[
                pl.BlockSpec((TM, input_size), lambda i, j: (i, 0)),   # x tile
                pl.BlockSpec((TM, hidden_size), lambda i, j: (i, 0)),  # h tile
                pl.BlockSpec((input_size, TN), lambda i, j: (0, j)),   # W panel
                pl.BlockSpec((hidden_size, TN), lambda i, j: (0, j)),  # U panel
                pl.BlockSpec((1, TN), lambda i, j: (0, j)),            # bias
            ],
            out_specs=pl.BlockSpec((TM, TN), lambda i, j: (i, j)),
        ),
        compiler_params=pltpu.CompilerParams(
            dimension_semantics=("parallel", "parallel"),
        ),
        cost_estimate=cost,
    )(x_c, h_c, W_p, U_p, b_p)

    return out_padded[:batch, :hidden_size]


def rnn_cell_reference(x, h, W, U, b):
    return jnp.tanh(x @ W + h @ U + b.reshape(1, -1))


if __name__ == "__main__":
    batch = 2
    input_size = 16
    hidden_size = 32

    key = jax.random.PRNGKey(0)
    kx, kh, kw, ku, kb = jax.random.split(key, 5)

    # Deterministic synthetic parameters (shapes per __init__ bookkeeping:
    # one W matrix, one U matrix, one bias vector; wRank=uRank=None).
    x = jax.random.normal(kx, (batch, input_size), dtype=jnp.float32)
    h = jax.random.normal(kh, (batch, hidden_size), dtype=jnp.float32)
    W = 0.1 * jax.random.normal(kw, (input_size, hidden_size), dtype=jnp.float32)
    U = 0.1 * jax.random.normal(ku, (hidden_size, hidden_size), dtype=jnp.float32)
    b = 0.1 * jax.random.normal(kb, (hidden_size,), dtype=jnp.float32)

    # One-time weight prep (cast + lane-pad) — hoisted out of the step path.
    W_p, U_p, b_p = jax.block_until_ready(prepare_rnn_cell_params(W, U, b))

    h_new = rnn_cell_forward(x, h, W_p, U_p, b_p)
    h_new = jax.block_until_ready(h_new)

    h_ref = rnn_cell_reference(x, h, W, U, b)
    assert h_new.shape == (batch, hidden_size)
    # bf16 weights/activations with f32 accumulation -> loosened tolerance.
    assert jnp.allclose(h_new, h_ref, atol=2e-2, rtol=2e-2), "mismatch vs reference"

    print("KERNEL_OK")
</pallas_src>

<mosaic_0001>
module attributes {stable_mosaic.version = 11 : i64} {
  func.func @rnn_cell_kernel(%arg0: i32, %arg1: i32, %arg2: memref<16x16xbf16, #tpu.memory_space<vmem>>, %arg3: memref<16x32xbf16, #tpu.memory_space<vmem>>, %arg4: memref<16x128xbf16, #tpu.memory_space<vmem>>, %arg5: memref<32x128xbf16, #tpu.memory_space<vmem>>, %arg6: memref<1x128xf32, #tpu.memory_space<vmem>>, %arg7: memref<16x128xf32, #tpu.memory_space<vmem>>) attributes {dimension_semantics = [#tpu.dimension_semantics<parallel>, #tpu.dimension_semantics<parallel>], iteration_bounds = array<i64: 1, 1>, scalar_prefetch = 0 : i64, scratch_operands = 0 : i64, tpu.core_type = #tpu.core_type<tc>, window_params = [{transform_indices = @transform_0, window_bounds = array<i64: 16, 16>}, {transform_indices = @transform_1, window_bounds = array<i64: 16, 32>}, {transform_indices = @transform_2, window_bounds = array<i64: 16, 128>}, {transform_indices = @transform_3, window_bounds = array<i64: 32, 128>}, {transform_indices = @transform_4, window_bounds = array<i64: 1, 128>}, {transform_indices = @transform_5, window_bounds = array<i64: 16, 128>}]} {
    %c0 = arith.constant 0 : index
    %c0_0 = arith.constant 0 : index
    %0 = vector.load %arg2[%c0, %c0_0] : memref<16x16xbf16, #tpu.memory_space<vmem>>, vector<16x16xbf16>
    %c0_1 = arith.constant 0 : index
    %c0_2 = arith.constant 0 : index
    %1 = vector.load %arg4[%c0_1, %c0_2] : memref<16x128xbf16, #tpu.memory_space<vmem>>, vector<16x128xbf16>
    %cst = arith.constant dense<0.000000e+00> : vector<16x128xf32>
    %2 = tpu.matmul %0, %1, %cst {dimension_numbers = #tpu.dot_dimension_numbers<[1], [0], [0], [1], [0, 0, 1, 1], [], []>} : vector<16x16xbf16>, vector<16x128xbf16>, vector<16x128xf32> -> vector<16x128xf32>
    %c0_3 = arith.constant 0 : index
    %c0_4 = arith.constant 0 : index
    %3 = vector.load %arg3[%c0_3, %c0_4] : memref<16x32xbf16, #tpu.memory_space<vmem>>, vector<16x32xbf16>
    %c0_5 = arith.constant 0 : index
    %c0_6 = arith.constant 0 : index
    %4 = vector.load %arg5[%c0_5, %c0_6] : memref<32x128xbf16, #tpu.memory_space<vmem>>, vector<32x128xbf16>
    %cst_7 = arith.constant dense<0.000000e+00> : vector<16x128xf32>
    %5 = tpu.matmul %3, %4, %cst_7 {dimension_numbers = #tpu.dot_dimension_numbers<[1], [0], [0], [1], [0, 0, 1, 1], [], []>} : vector<16x32xbf16>, vector<32x128xbf16>, vector<16x128xf32> -> vector<16x128xf32>
    %6 = arith.addf %2, %5 : vector<16x128xf32>
    %c0_8 = arith.constant 0 : index
    %c0_9 = arith.constant 0 : index
    %7 = vector.load %arg6[%c0_8, %c0_9] : memref<1x128xf32, #tpu.memory_space<vmem>>, vector<1x128xf32>
    %8 = vector.broadcast %7 : vector<1x128xf32> to vector<16x128xf32>
    %9 = arith.addf %6, %8 : vector<16x128xf32>
    %10 = math.tanh %9 : vector<16x128xf32>
    %c0_10 = arith.constant 0 : index
    %c0_11 = arith.constant 0 : index
    %11 = vector.load %arg7[%c0_10, %c0_11] : memref<16x128xf32, #tpu.memory_space<vmem>>, vector<16x128xf32>
    tpu.vector_store %arg7[%c0_10, %c0_11], %10 {strides = array<i32>} : memref<16x128xf32, #tpu.memory_space<vmem>>, vector<16x128xf32>,
    return
  }
  func.func @transform_0(%arg0: i32, %arg1: i32) -> (i32, i32) {
    %c0_i32 = arith.constant 0 : i32
    %c0_i32_0 = arith.constant 0 : i32
    return %arg0, %c0_i32 : i32, i32
  }
  func.func @transform_1(%arg0: i32, %arg1: i32) -> (i32, i32) {
    %c0_i32 = arith.constant 0 : i32
    %c0_i32_0 = arith.constant 0 : i32
    return %arg0, %c0_i32 : i32, i32
  }
  func.func @transform_2(%arg0: i32, %arg1: i32) -> (i32, i32) {
    %c0_i32 = arith.constant 0 : i32
    %c0_i32_0 = arith.constant 0 : i32
    return %c0_i32, %arg1 : i32, i32
  }
  func.func @transform_3(%arg0: i32, %arg1: i32) -> (i32, i32) {
    %c0_i32 = arith.constant 0 : i32
    %c0_i32_0 = arith.constant 0 : i32
    return %c0_i32, %arg1 : i32, i32
  }
  func.func @transform_4(%arg0: i32, %arg1: i32) -> (i32, i32) {
    %c0_i32 = arith.constant 0 : i32
    %c0_i32_0 = arith.constant 0 : i32
    return %c0_i32, %arg1 : i32, i32
  }
  func.func @transform_5(%arg0: i32, %arg1: i32) -> (i32, i32) {
    %c0_i32 = arith.constant 0 : i32
    return %arg0, %arg1 : i32, i32
  }
}

</mosaic_0001>

<bundles_post_ra>
// kernel: rnn_cell_forward.1
= control target key start
LH: loop header
LB: loop body
LE: loop exit
PB: predicated region body
PF: predicated region fallthrough
CT: control target
= control target key end

     0   :  { %v204_v0 = vmov 0.0   ;;  %vm205_vm0 = vmmov 0   ;;  %vm104_vm1 = vcmask 130048   ;;  %vm48_vm2 = vcmask 261120   ;;  %s260_s3 = inlined_call_operand.vmem [shape: bf16[32,128], index: 3, kind: input, shape index: {}]   ;;  %s261_s2 = inlined_call_operand.vmem [shape: bf16[16,128], index: 2, kind: input, shape index: {}]   ;;  %s262_s0 = inlined_call_operand.vmem [shape: bf16[16,16], index: 0, kind: input, shape index: {}]   ;;  %s263_s1 = inlined_call_operand.vmem [shape: bf16[16,32], index: 1, kind: input, shape index: {}]   ;;  %s264_s4 = inlined_call_operand.vmem [shape: f32[1,128], index: 4, kind: input, shape index: {}]   ;;  %s265_s5 = inlined_call_operand.vmem [shape: f32[16,128], index: 5, kind: output, shape index: {}]  }
   0x1   :  { %179 = vmatprep.subr.bf16.mxu0 %v204_v0  ;;  %187 = vmatprep.subr.bf16.mxu1 %v204_v0  ;;  %v195_v1 = vld [vmem:[%s260_s3 + $0x8] sm:$0xff]   ;;  %v196_v2 = vld [vmem:[%s261_s2] sm:$0xff]  }
   0x2   :  { %189 = vmatprep.mubr.msk.bf16.mxu1 %vm205_vm0, %v204_v0  ;;  %183 = vmatprep.mubr.msk.bf16.mxu0 %vm205_vm0, %v204_v0  ;;  %v197_v3 = vld [vmem:[%s262_s0] sm:$0xff]  }
   0x3   :  { %180 = vmatpush3.bf16.msra.mxu0 %v195_v1  ;;  %188 = vmatpush3.bf16.msra.mxu1 %v196_v2  ;;  %v198_v4 = vld [vmem:[%s260_s3] sm:$0xff]  }
   0x4   :  { %181 = vmatprep.subr.bf16.mxu0 %v204_v0  ;;  %v199_v5 = vld [vmem:[%s263_s1] sm:$0xff]  }
   0x5   :  { %v173_v9 = vld [vmem:[%s264_s4] ss:$0 sm:$0xff] }
   0x6   :  { %190 = vmatmul.mubr.msk.bf16.vlgmr.msra.gmra.mxu1 %vm104_vm1, %v197_v3 }
   0x7   :  { %182 = vmatpush3.bf16.msra.mxu0 %v198_v4 }
   0xa   :  { %184 = vmatmul.mubr.msk.bf16.vlgmr.msra.gmra.mxu0 %vm48_vm2, %v199_v5 }
  0xc6   :  { %v142_v6 = vpop.f32.mrf.mxu1 }
  0xc8   :  { %v191_v7 = vpop.f32.mrf.mxu1 }
  0xca   :  { %v86_v8 = vpop.f32.mrf.mxu0  ;;  %v145_v11 = vpop.f32.mrf.mxu1 }
  0xcb   :  { %v143_v10 = vadd.f32 %v142_v6, %v86_v8 }
  0xcc   :  { %v185_v12 = vpop.f32.mrf.mxu0  ;;  %v192_v14 = vpop.f32.mrf.mxu1 }
  0xcd   :  { %v156_v13 = vadd.f32 %v173_v9, %v143_v10 }
  0xce   :  { %v89_v15 = vpop.f32.mrf.mxu0 }
  0xcf   :  { %200 = vtanh.f32 %v156_v13  ;;  %v146_v16 = vadd.f32 %v145_v11, %v89_v15 }
  0xd0   :  { %v186_v17 = vpop.f32.mrf.mxu0 }
  0xd1   :  { %v157_v18 = vadd.f32 %v173_v9, %v146_v16 }
  0xd3   :  { %202 = vtanh.f32 %v157_v18 }
  0xdc   :  { %v201_v19 = vpop.eup %200 }
  0xdd   :  { %160 = vst [vmem:[%s265_s5] sm:$0xff] %v201_v19 }
  0xe0   :  { %v203_v20 = vpop.eup %202 }
  0xe1   :  { %161 = vst [vmem:[%s265_s5 + $0x8] sm:$0xff] %v203_v20 }

</bundles_post_ra>
